<compile_context>
chip_gen: v7x
topology: tpu7x:2x2x1
jax: 0.10.0
libtpu: 0.0.40
codegen_flags: <defaults>
</compile_context>

<pallas_src>
import jax
import jax.numpy as jnp
from jax.experimental import pallas as pl
from jax.experimental.pallas import tpu as pltpu

HIDDEN = 2000        # logical hidden width (matches nn.Linear(S+A, 2000))
HIDDEN_PAD = 2048    # lane-aligned hidden width used inside the kernel
OUT_PAD = 128        # lane-dense padded output width (logical output dim = 1)


def critic_kernel(xy_ref, w1_ref, b1_ref, w2_ref, b2_ref, o_ref):
    # fc1 + ReLU: bf16 x bf16 on the MXU with f32 accumulation.
    h = jnp.dot(xy_ref[...], w1_ref[...], preferred_element_type=jnp.float32)
    h = jnp.maximum(h + b1_ref[...], 0.0)          # b1 is (1, HIDDEN_PAD), broadcasts
    # fc2 (Q-value head), lane-dense padded output columns (only col 0 is live).
    q = jnp.dot(h.astype(jnp.bfloat16), w2_ref[...],
                preferred_element_type=jnp.float32)
    o_ref[...] = (q + b2_ref[...]).astype(o_ref.dtype)


def _round_up(n, m):
    return ((n + m - 1) // m) * m


def critic_forward(x, y, w1, b1, w2, b2, *, block_b=256):
    """x: (B, 1, state_dim); y: (B, action_dim) or (B, 1, action_dim).

    w1: (S+A, HIDDEN_PAD) bf16, b1: (1, HIDDEN_PAD) f32,
    w2: (HIDDEN_PAD, OUT_PAD) bf16, b2: (1, OUT_PAD) f32.
    Returns (B, 1, 1) f32, matching the PyTorch critic.
    """
    # Mirror the PyTorch forward: unsqueeze y if 2-D, concat along dim 2.
    if y.ndim == 2:
        y = y[:, None, :]
    xy = jnp.concatenate([x, y], axis=2)            # (B, 1, S+A)
    B = xy.shape[0]
    K = xy.shape[-1]
    xy2 = xy.reshape(B, K).astype(jnp.bfloat16)

    # Batch tile: multiple of 8 sublanes, bounded VMEM, padded batch.
    tm = min(block_b, _round_up(B, 8))
    B_pad = _round_up(B, tm)
    if B_pad != B:
        xy2 = jnp.pad(xy2, ((0, B_pad - B), (0, 0)))

    hidden = w1.shape[1]
    out_pad = w2.shape[1]
    grid = (B_pad // tm,)

    cost = pl.CostEstimate(
        flops=2 * B_pad * (K * hidden + hidden * out_pad),
        transcendentals=0,
        bytes_accessed=(xy2.size * 2 + w1.size * 2 + w2.size * 2
                        + b1.size * 4 + b2.size * 4 + B_pad * out_pad * 4),
    )

    out = pl.pallas_call(
        critic_kernel,
        out_shape=jax.ShapeDtypeStruct((B_pad, out_pad), jnp.float32),
        grid_spec=pltpu.PrefetchScalarGridSpec(
            num_scalar_prefetch=0,
            grid=grid,
            in_specs=[
                pl.BlockSpec((tm, K), lambda i: (i, 0)),          # activations
                pl.BlockSpec((K, hidden), lambda i: (0, 0)),      # W1 (resident)
                pl.BlockSpec((1, hidden), lambda i: (0, 0)),      # b1
                pl.BlockSpec((hidden, out_pad), lambda i: (0, 0)),# W2 (resident)
                pl.BlockSpec((1, out_pad), lambda i: (0, 0)),     # b2
            ],
            out_specs=pl.BlockSpec((tm, out_pad), lambda i: (i, 0)),
        ),
        compiler_params=pltpu.CompilerParams(
            dimension_semantics=("parallel",),
        ),
        cost_estimate=cost,
    )(xy2, w1, b1, w2, b2)

    # Drop the batch / lane padding and restore the (B, 1, 1) torch shape.
    return out[:B, :1].reshape(B, 1, 1)


def init_critic_params(key, state_dim, action_dim):
    """PyTorch-Linear-style init (U[-1/sqrt(fan_in), +]) with lane padding.

    Returns (padded kernel params, unpadded f32 reference params).
    """
    k1, k2, k3, k4 = jax.random.split(key, 4)
    fan1 = state_dim + action_dim
    bound1 = 1.0 / float(fan1) ** 0.5
    bound2 = 1.0 / float(HIDDEN) ** 0.5
    w1 = jax.random.uniform(k1, (fan1, HIDDEN), jnp.float32, -bound1, bound1)
    b1 = jax.random.uniform(k2, (1, HIDDEN), jnp.float32, -bound1, bound1)
    w2 = jax.random.uniform(k3, (HIDDEN, 1), jnp.float32, -bound2, bound2)
    b2 = jax.random.uniform(k4, (1, 1), jnp.float32, -bound2, bound2)

    # Zero-pad to lane-aligned shapes; padded rows/cols contribute exactly 0.
    w1p = jnp.pad(w1, ((0, 0), (0, HIDDEN_PAD - HIDDEN))).astype(jnp.bfloat16)
    b1p = jnp.pad(b1, ((0, 0), (0, HIDDEN_PAD - HIDDEN)))
    w2p = jnp.pad(w2, ((0, HIDDEN_PAD - HIDDEN), (0, OUT_PAD - 1))).astype(jnp.bfloat16)
    b2p = jnp.pad(b2, ((0, 0), (0, OUT_PAD - 1)))
    return (w1p, b1p, w2p, b2p), (w1, b1, w2, b2)


if __name__ == "__main__":
    # Small, module-consistent shapes: state (B, 1, S), action (B, A).
    batch, state_dim, action_dim = 2, 32, 8

    key = jax.random.PRNGKey(0)
    kx, ky, kp = jax.random.split(key, 3)
    x = jax.random.normal(kx, (batch, 1, state_dim), jnp.float32)
    y = jax.random.normal(ky, (batch, action_dim), jnp.float32)
    (w1p, b1p, w2p, b2p), (w1, b1, w2, b2) = init_critic_params(
        kp, state_dim, action_dim)

    out = critic_forward(x, y, w1p, b1p, w2p, b2p)
    jax.block_until_ready(out)

    # Pure-JAX reference with matching bf16-weight / f32-accumulate precision.
    xy = jnp.concatenate([x, y[:, None, :]], axis=2).reshape(batch, -1)
    h_ref = jnp.maximum(
        jnp.dot(xy.astype(jnp.bfloat16), w1.astype(jnp.bfloat16),
                preferred_element_type=jnp.float32) + b1, 0.0)
    q_ref = (jnp.dot(h_ref.astype(jnp.bfloat16), w2.astype(jnp.bfloat16),
                     preferred_element_type=jnp.float32) + b2)
    q_ref = q_ref.reshape(batch, 1, 1)

    assert out.shape == (batch, 1, 1)
    assert jnp.allclose(out, q_ref, atol=2e-2, rtol=2e-2), (out, q_ref)

    print("KERNEL_OK")
</pallas_src>

<mosaic_0001>
module attributes {stable_mosaic.version = 11 : i64} {
  func.func @critic_kernel(%arg0: i32, %arg1: memref<8x40xbf16, #tpu.memory_space<vmem>>, %arg2: memref<40x2048xbf16, #tpu.memory_space<vmem>>, %arg3: memref<1x2048xf32, #tpu.memory_space<vmem>>, %arg4: memref<2048x128xbf16, #tpu.memory_space<vmem>>, %arg5: memref<1x128xf32, #tpu.memory_space<vmem>>, %arg6: memref<8x128xf32, #tpu.memory_space<vmem>>) attributes {dimension_semantics = [#tpu.dimension_semantics<parallel>], iteration_bounds = array<i64: 1>, scalar_prefetch = 0 : i64, scratch_operands = 0 : i64, tpu.core_type = #tpu.core_type<tc>, window_params = [{transform_indices = @transform_0, window_bounds = array<i64: 8, 40>}, {pipeline_mode = #tpu.pipeline_mode<synchronous>, transform_indices = @transform_1, window_bounds = array<i64: 40, 2048>}, {pipeline_mode = #tpu.pipeline_mode<synchronous>, transform_indices = @transform_2, window_bounds = array<i64: 1, 2048>}, {pipeline_mode = #tpu.pipeline_mode<synchronous>, transform_indices = @transform_3, window_bounds = array<i64: 2048, 128>}, {pipeline_mode = #tpu.pipeline_mode<synchronous>, transform_indices = @transform_4, window_bounds = array<i64: 1, 128>}, {transform_indices = @transform_5, window_bounds = array<i64: 8, 128>}]} {
    %c0 = arith.constant 0 : index
    %c0_0 = arith.constant 0 : index
    %0 = vector.load %arg1[%c0, %c0_0] : memref<8x40xbf16, #tpu.memory_space<vmem>>, vector<8x40xbf16>
    %c0_1 = arith.constant 0 : index
    %c0_2 = arith.constant 0 : index
    %1 = vector.load %arg2[%c0_1, %c0_2] : memref<40x2048xbf16, #tpu.memory_space<vmem>>, vector<40x2048xbf16>
    %cst = arith.constant dense<0.000000e+00> : vector<8x2048xf32>
    %2 = tpu.matmul %0, %1, %cst {dimension_numbers = #tpu.dot_dimension_numbers<[1], [0], [0], [1], [0, 0, 1, 1], [], []>} : vector<8x40xbf16>, vector<40x2048xbf16>, vector<8x2048xf32> -> vector<8x2048xf32>
    %c0_3 = arith.constant 0 : index
    %c0_4 = arith.constant 0 : index
    %3 = vector.load %arg3[%c0_3, %c0_4] : memref<1x2048xf32, #tpu.memory_space<vmem>>, vector<1x2048xf32>
    %4 = vector.broadcast %3 : vector<1x2048xf32> to vector<8x2048xf32>
    %5 = arith.addf %2, %4 : vector<8x2048xf32>
    %cst_5 = arith.constant 0.000000e+00 : f32
    %6 = vector.broadcast %cst_5 : f32 to vector<8x2048xf32>
    %7 = arith.maximumf %5, %6 : vector<8x2048xf32>
    %8 = arith.truncf %7 : vector<8x2048xf32> to vector<8x2048xbf16>
    %c0_6 = arith.constant 0 : index
    %c0_7 = arith.constant 0 : index
    %9 = vector.load %arg4[%c0_6, %c0_7] : memref<2048x128xbf16, #tpu.memory_space<vmem>>, vector<2048x128xbf16>
    %cst_8 = arith.constant dense<0.000000e+00> : vector<8x128xf32>
    %10 = tpu.matmul %8, %9, %cst_8 {dimension_numbers = #tpu.dot_dimension_numbers<[1], [0], [0], [1], [0, 0, 1, 1], [], []>} : vector<8x2048xbf16>, vector<2048x128xbf16>, vector<8x128xf32> -> vector<8x128xf32>
    %c0_9 = arith.constant 0 : index
    %c0_10 = arith.constant 0 : index
    %11 = vector.load %arg5[%c0_9, %c0_10] : memref<1x128xf32, #tpu.memory_space<vmem>>, vector<1x128xf32>
    %12 = vector.broadcast %11 : vector<1x128xf32> to vector<8x128xf32>
    %13 = arith.addf %10, %12 : vector<8x128xf32>
    %c0_11 = arith.constant 0 : index
    %c0_12 = arith.constant 0 : index
    %14 = vector.load %arg6[%c0_11, %c0_12] : memref<8x128xf32, #tpu.memory_space<vmem>>, vector<8x128xf32>
    tpu.vector_store %arg6[%c0_11, %c0_12], %13 {strides = array<i32>} : memref<8x128xf32, #tpu.memory_space<vmem>>, vector<8x128xf32>,
    return
  }
  func.func @transform_0(%arg0: i32) -> (i32, i32) {
    %c0_i32 = arith.constant 0 : i32
    %c0_i32_0 = arith.constant 0 : i32
    return %arg0, %c0_i32 : i32, i32
  }
  func.func @transform_1(%arg0: i32) -> (i32, i32) {
    %c0_i32 = arith.constant 0 : i32
    %c0_i32_0 = arith.constant 0 : i32
    %c0_i32_1 = arith.constant 0 : i32
    return %c0_i32, %c0_i32_0 : i32, i32
  }
  func.func @transform_2(%arg0: i32) -> (i32, i32) {
    %c0_i32 = arith.constant 0 : i32
    %c0_i32_0 = arith.constant 0 : i32
    %c0_i32_1 = arith.constant 0 : i32
    return %c0_i32, %c0_i32_0 : i32, i32
  }
  func.func @transform_3(%arg0: i32) -> (i32, i32) {
    %c0_i32 = arith.constant 0 : i32
    %c0_i32_0 = arith.constant 0 : i32
    %c0_i32_1 = arith.constant 0 : i32
    return %c0_i32, %c0_i32_0 : i32, i32
  }
  func.func @transform_4(%arg0: i32) -> (i32, i32) {
    %c0_i32 = arith.constant 0 : i32
    %c0_i32_0 = arith.constant 0 : i32
    %c0_i32_1 = arith.constant 0 : i32
    return %c0_i32, %c0_i32_0 : i32, i32
  }
  func.func @transform_5(%arg0: i32) -> (i32, i32) {
    %c0_i32 = arith.constant 0 : i32
    %c0_i32_0 = arith.constant 0 : i32
    return %arg0, %c0_i32 : i32, i32
  }
}

</mosaic_0001>

<bundles_post_ra>
// kernel: tpu_custom_call.1
= control target key start
LH: loop header
LB: loop body
LE: loop exit
PB: predicated region body
PF: predicated region fallthrough
CT: control target
= control target key end

     0   :  { %10 = vsyncpa [#allocation3], 0  ;;  %s3045_s0 = inlined_call_operand.hbm [shape: bf16[8,40], index: 0, kind: input, shape index: {}]   ;;  %s3046_s1 = inlined_call_operand.hbm [shape: bf16[40,2048], index: 1, kind: input, shape index: {}]   ;;  %s3047_s2 = inlined_call_operand.hbm [shape: f32[1,2048], index: 2, kind: input, shape index: {}]   ;;  %s3048_s3 = inlined_call_operand.hbm [shape: bf16[2048,128], index: 3, kind: input, shape index: {}]   ;;  %s3049_s4 = inlined_call_operand.vmem [shape: f32[1,128], index: 4, kind: input, shape index: {}]   ;;  %s3050_s5 = inlined_call_operand.hbm [shape: f32[8,128], index: 5, kind: output, shape index: {}]  }
   0x1   :  { %11 = vsyncpa [#allocation6], 0 }
   0x2   :  { %12 = vsyncpa [#allocation9], 0 }
   0x3   :  { %13 = vsyncpa [#allocation4], 0  ;;  %s2820_s18 = smov [#allocation5]   ;;  %s2702_s22 = scalar_lea.hbm %s3046_s1, 5120 }
   0x4   :  { %s29_s19 = sshll.u32 %s2820_s18, 4  ;;  %p2703_p0 = scmp.ne.s32.totalorder %s3046_s1, %s2702_s22  ;;  %s30_s19 = int_to_ptr.vmem [resolvable:$true] %s29_s19 }
   0x5   :  { %p2706_p1 = scmp.lt.u32.totalorder %s2702_s22, %s3046_s1 }
   0x7   :  { %p2708_p2 = pnand %p2706_p1, %p2703_p0 }
   0x9   :  { %2711 = shalt.err (!%p2708_p2)
}
   0xa   :  { %s2712_s27 = scalar_lea.vmem %s30_s19, 5120  ;;  %p2717_p4 = scmp.lt.s32.totalorder %s30_s19, %s30_s19 }
   0xb   :  { %p2713_p3 = scmp.ne.s32.totalorder %s30_s19, %s2712_s27  ;;  %p2718_p5 = scmp.lt.s32.totalorder %s2712_s27, %s2712_s27 }
   0xd   :  { %p2719_p6 = por %p2718_p5, %p2717_p4 }
   0xf   :  { %p2720_p7 = pnand %p2719_p6, %p2713_p3 }
  0x11   :  { %2723 = shalt.err (!%p2720_p7)
}
  0x12   :  { %s2821_s28 = smov 1024   ;;  %s2822_s29 = smov 64  }
  0x13   :  { %35 = dma.hbm_to_vmem [thread:$0]  %s3046_s1, 5120, %s30_s19, [#allocation6], %s2821_s28, %s2821_s28, %s2822_s29  }
  0x14   :  { %s2823_s7 = smov [#allocation2]   ;;  %s2824_s9 = smov [#allocation7]  }
  0x15   :  { %s20_s8 = sshll.u32 %s2823_s7, 4  ;;  %s42_s10 = sshll.u32 %s2824_s9, 4  ;;  %s21_s8 = int_to_ptr.vmem [resolvable:$true] %s20_s8  ;;  %s43_s10 = int_to_ptr.vmem [resolvable:$true] %s42_s10 }
  0x16   :  { %s2724_s13 = scalar_lea.hbm %s3045_s0, 64 }
  0x17   :  { %p2725_p8 = scmp.ne.s32.totalorder %s3045_s0, %s2724_s13  ;;  %p2728_p9 = scmp.lt.u32.totalorder %s2724_s13, %s3045_s0 }
  0x19   :  { %p2730_p10 = pnand %p2728_p9, %p2725_p8 }
  0x1b   :  { %2733 = shalt.err (!%p2730_p10)
}
  0x1c   :  { %s2734_s1 = scalar_lea.vmem %s21_s8, 64  ;;  %p2739_p12 = scmp.lt.s32.totalorder %s21_s8, %s21_s8 }
  0x1d   :  { %p2735_p11 = scmp.ne.s32.totalorder %s21_s8, %s2734_s1  ;;  %p2740_p13 = scmp.lt.s32.totalorder %s2734_s1, %s2734_s1 }
  0x1f   :  { %p2741_p0 = por %p2740_p13, %p2739_p12 }
  0x21   :  { %p2742_p1 = pnand %p2741_p0, %p2735_p11 }
  0x23   :  { %2745 = shalt.err (!%p2742_p1)
}
  0x24   :  { %23 = dma.hbm_to_vmem [thread:$0]  %s3045_s0, 64, %s21_s8, [#allocation3]  }
  0x25   :  { %s2746_s22 = scalar_lea.hbm %s3047_s2, 256 }
  0x26   :  { %p2747_p2 = scmp.ne.s32.totalorder %s3047_s2, %s2746_s22  ;;  %p2750_p3 = scmp.lt.u32.totalorder %s2746_s22, %s3047_s2 }
  0x28   :  { %p2752_p4 = pnand %p2750_p3, %p2747_p2 }
  0x2a   :  { %2755 = shalt.err (!%p2752_p4)
}
  0x2b   :  { %s2756_s27 = scalar_lea.vmem %s43_s10, 256  ;;  %p2761_p6 = scmp.lt.s32.totalorder %s43_s10, %s43_s10 }
  0x2c   :  { %p2757_p5 = scmp.ne.s32.totalorder %s43_s10, %s2756_s27  ;;  %p2762_p7 = scmp.lt.s32.totalorder %s2756_s27, %s2756_s27 }
  0x2e   :  { %p2763_p8 = por %p2762_p7, %p2761_p6 }
  0x30   :  { %p2764_p9 = pnand %p2763_p8, %p2757_p5 }
  0x32   :  { %2767 = shalt.err (!%p2764_p9)
}
  0x33   :  { %45 = dma.hbm_to_vmem [thread:$0]  %s3047_s2, 256, %s43_s10, [#allocation6]  }
  0x34   :  { %s2825_s30 = smov [#allocation8]   ;;  %s2768_s9 = scalar_lea.hbm %s3048_s3, 16384 }
  0x35   :  { %s51_s6 = sshll.u32 %s2825_s30, 4  ;;  %p2769_p10 = scmp.ne.s32.totalorder %s3048_s3, %s2768_s9  ;;  %s52_s6 = int_to_ptr.vmem [resolvable:$true] %s51_s6 }
  0x36   :  { %p2772_p11 = scmp.lt.u32.totalorder %s2768_s9, %s3048_s3 }
  0x38   :  { %p2774_p12 = pnand %p2772_p11, %p2769_p10 }
  0x3a   :  { %2777 = shalt.err (!%p2774_p12)
}
  0x3b   :  { %s2778_s15 = scalar_lea.vmem %s52_s6, 16384  ;;  %p2783_p0 = scmp.lt.s32.totalorder %s52_s6, %s52_s6 }
  0x3c   :  { %p2779_p13 = scmp.ne.s32.totalorder %s52_s6, %s2778_s15  ;;  %p2784_p1 = scmp.lt.s32.totalorder %s2778_s15, %s2778_s15 }
  0x3e   :  { %p2785_p2 = por %p2784_p1, %p2783_p0 }
  0x40   :  { %p2786_p3 = pnand %p2785_p2, %p2779_p13 }
  0x42   :  { %2789 = shalt.err (!%p2786_p3)
}
  0x43   :  { %s2826_s2 = smov 4  }
  0x44   :  { %57 = dma.hbm_to_vmem [thread:$0]  %s3048_s3, 16384, %s52_s6, [#allocation9], %s2822_s29, %s2822_s29, %s2826_s2  }
  0x45   :  { %2812 = dma.done.wait [#allocation3], 64  }
  0x46   :  { %2813 = vsyncadd [#allocation3], 4294967232 }
  0x47   :  { %2814 = dma.done.wait [#allocation6], 5376  }
  0x48   :  { %2815 = vsyncadd [#allocation6], 4294961920 }
  0x49   :  { %2816 = dma.done.wait [#allocation9], 16384  }
  0x4a   :  { %2817 = vsyncadd [#allocation9], 4294950912  ;;  %v2827_v0 = vmov 0   ;;  %v74_v1 = vld [vmem:[#allocation5] sm:$0xff]  ;;  %v75_v3 = vld [vmem:[#allocation5 + $0x8] sm:$0xff]  ;;  %vm402_vm0 = vcmask 1043456  }
  0x4b   :  { %483 = vmatprep.mubr.bf16.mxu0 %v2827_v0  ;;  %524 = vmatprep.mubr.bf16.mxu1 %v2827_v0  ;;  %v82_v2 = vld [vmem:[#allocation5 + $0x40] sm:$0xff]  ;;  %v83_v5 = vld [vmem:[#allocation5 + $0x48] sm:$0xff]  ;;  %v76_v23 = vld [vmem:[#allocation5 + $0x10] sm:$0xff]  ;;  %vm398_vm1 = vcmask 326656  }
  0x4c   :  { %v2181_v4 = vcombine.high %v74_v1, %v82_v2  ;;  %v2180_v6 = vcombine.low %v74_v1, %v82_v2  ;;  %v90_v7 = vld [vmem:[#allocation5 + $0x80] sm:$0xff]  ;;  %v2183_v9 = vcombine.high %v75_v3, %v83_v5  ;;  %v2182_v10 = vcombine.low %v75_v3, %v83_v5  ;;  %v91_v12 = vld [vmem:[#allocation5 + $0x88] sm:$0xff]  ;;  %v84_v24 = vld [vmem:[#allocation5 + $0x50] sm:$0xff] }
  0x4d   :  { %v98_v8 = vld [vmem:[#allocation5 + $0xc0] sm:$0xff]  ;;  %v99_v13 = vld [vmem:[#allocation5 + $0xc8] sm:$0xff]  ;;  %v77_v25 = vld [vmem:[#allocation5 + $0x18] sm:$0xff]  ;;  %v2185_v28 = vcombine.high %v76_v23, %v84_v24  ;;  %v2184_v36 = vcombine.low %v76_v23, %v84_v24 }
  0x4e   :  { %v2197_v11 = vcombine.high %v90_v7, %v98_v8  ;;  %v106_v14 = vld [vmem:[#allocation5 + $0x100] sm:$0xff]  ;;  %451 = vmatprep.subr.bf16.mxu0 %v2181_v4  ;;  %v2199_v15 = vcombine.high %v91_v12, %v99_v13  ;;  %v107_v16 = vld [vmem:[#allocation5 + $0x108] sm:$0xff]  ;;  %492 = vmatprep.subr.bf16.mxu1 %v2183_v9  ;;  %v2196_v17 = vcombine.low %v90_v7, %v98_v8  ;;  %v85_v26 = vld [vmem:[#allocation5 + $0x58] sm:$0xff] }
  0x4f   :  { %452 = vmatpush1.bf16.msra.mxu0 %v2180_v6  ;;  %493 = vmatpush1.bf16.msra.mxu1 %v2182_v10  ;;  %v2198_v18 = vcombine.low %v91_v12, %v99_v13  ;;  %v2213_v19 = vcombine.high %v106_v14, %v106_v14  ;;  %v2212_v20 = vcombine.low %v106_v14, %v106_v14  ;;  %v92_v31 = vld [vmem:[#allocation5 + $0x90] sm:$0xff]  ;;  %v93_v33 = vld [vmem:[#allocation5 + $0x98] sm:$0xff]  ;;  %v78_v43 = vld [vmem:[#allocation5 + $0x20] sm:$0xff] }
  0x50   :  { %453 = vmatprep.subr.bf16.mxu0 %v2197_v11  ;;  %494 = vmatprep.subr.bf16.mxu1 %v2199_v15  ;;  %v2215_v21 = vcombine.high %v107_v16, %v107_v16  ;;  %v2214_v22 = vcombine.low %v107_v16, %v107_v16  ;;  %v2187_v30 = vcombine.high %v77_v25, %v85_v26  ;;  %v100_v32 = vld [vmem:[#allocation5 + $0xd0] sm:$0xff]  ;;  %v101_v34 = vld [vmem:[#allocation5 + $0xd8] sm:$0xff]  ;;  %v86_v47 = vld [vmem:[#allocation5 + $0x60] sm:$0xff] }
  0x51   :  { %v404_v27 = vsel %vm402_vm0, %v2212_v20, 0  ;;  %v2916_v35 = vld [vmem:[#allocation2] sm:$0xf]  ;;  %v2186_v37 = vcombine.low %v77_v25, %v85_v26  ;;  %v2201_v38 = vcombine.high %v92_v31, %v100_v32  ;;  %v2203_v39 = vcombine.high %v93_v33, %v101_v34  ;;  %v108_v40 = vld [vmem:[#allocation5 + $0x110] sm:$0xff]  ;;  %v79_v50 = vld [vmem:[#allocation5 + $0x28] sm:$0xff] }
  0x52   :  { %v410_v29 = vsel %vm402_vm0, %v2214_v22, 0  ;;  %v109_v41 = vld [vmem:[#allocation5 + $0x118] sm:$0xff]  ;;  %v2200_v42 = vcombine.low %v92_v31, %v100_v32  ;;  %v2202_v44 = vcombine.low %v93_v33, %v101_v34  ;;  %v2217_v45 = vcombine.high %v108_v40, %v108_v40  ;;  %v87_v51 = vld [vmem:[#allocation5 + $0x68] sm:$0xff]  ;;  %v94_v52 = vld [vmem:[#allocation5 + $0xa0] sm:$0xff] }
  0x53   :  { %454 = vmatpush1.bf16.msra.mxu0 %v2196_v17  ;;  %495 = vmatpush1.bf16.msra.mxu1 %v2198_v18  ;;  %v2216_v46 = vcombine.low %v108_v40, %v108_v40  ;;  %v2219_v48 = vcombine.high %v109_v41, %v109_v41  ;;  %v2218_v49 = vcombine.low %v109_v41, %v109_v41  ;;  %v102_v55 = vld [vmem:[#allocation5 + $0xe0] sm:$0xff]  ;;  %v95_v58 = vld [vmem:[#allocation5 + $0xa8] sm:$0xff]  ;;  %v80_v4 = vld [vmem:[#allocation5 + $0x30] sm:$0xff] }
  0x54   :  { %2228 = vmatprep.subr.msk.bf16.mxu0 %vm402_vm0, %v2213_v19  ;;  %2230 = vmatprep.subr.msk.bf16.mxu1 %vm402_vm0, %v2215_v21  ;;  %v2189_v54 = vcombine.high %v78_v43, %v86_v47  ;;  %v2191_v57 = vcombine.high %v79_v50, %v87_v51  ;;  %v103_v59 = vld [vmem:[#allocation5 + $0xe8] sm:$0xff]  ;;  %v2188_v60 = vcombine.low %v78_v43, %v86_v47  ;;  %v110_v1 = vld [vmem:[#allocation5 + $0x120] sm:$0xff]  ;;  %v88_v5 = vld [vmem:[#allocation5 + $0x70] sm:$0xff] }
  0x55   :  { %v416_v53 = vsel %vm402_vm0, %v2216_v46, 0  ;;  %v422_v56 = vsel %vm402_vm0, %v2218_v49, 0  ;;  %v2190_v61 = vcombine.low %v79_v50, %v87_v51  ;;  %v2205_v62 = vcombine.high %v94_v52, %v102_v55  ;;  %v111_v2 = vld [vmem:[#allocation5 + $0x128] sm:$0xff]  ;;  %v81_v9 = vld [vmem:[#allocation5 + $0x38] sm:$0xff]  ;;  %v112_v10 = vld [vmem:[#allocation5 + $0x130] sm:$0xff] }
  0x56   :  { %v2207_v63 = vcombine.high %v95_v58, %v103_v59  ;;  %v2204_v3 = vcombine.low %v94_v52, %v102_v55  ;;  %v2206_v6 = vcombine.low %v95_v58, %v103_v59  ;;  %v2221_v7 = vcombine.high %v110_v1, %v110_v1  ;;  %v113_v13 = vld [vmem:[#allocation5 + $0x138] sm:$0xff]  ;;  %v96_v15 = vld [vmem:[#allocation5 + $0xb0] sm:$0xff]  ;;  %v2582_v43 = vld [vmem:[#allocation8 + $0x50] sm:$0xff]  }
  0x57   :  { %456 = vmatpush1.bf16.msra.mxu0 %v404_v27  ;;  %497 = vmatpush1.bf16.msra.mxu1 %v410_v29  ;;  %v2220_v8 = vcombine.low %v110_v1, %v110_v1  ;;  %v2223_v11 = vcombine.high %v111_v2, %v111_v2  ;;  %v2222_v12 = vcombine.low %v111_v2, %v111_v2  ;;  %v89_v14 = vld [vmem:[#allocation5 + $0x78] sm:$0xff]  ;;  %v104_v18 = vld [vmem:[#allocation5 + $0xf0] sm:$0xff]  ;;  %v2585_v46 = vld [vmem:[#allocation8 + $0x90] sm:$0xff]  }
  0x58   :  { %533 = vmatprep.subr.bf16.mxu0 %v2185_v28  ;;  %574 = vmatprep.subr.bf16.mxu1 %v2187_v30  ;;  %v2193_v17 = vcombine.high %v80_v4, %v88_v5  ;;  %v2224_v19 = vcombine.low %v112_v10, %v112_v10  ;;  %v2226_v20 = vcombine.low %v113_v13, %v113_v13  ;;  %v97_v23 = vld [vmem:[#allocation5 + $0xb8] sm:$0xff]  ;;  %v2586_v47 = vld [vmem:[#allocation8 + $0x58] sm:$0xff]   ;;  %v2590_v51 = vld [vmem:[#allocation8 + $0x60] sm:$0xff]  }
  0x59   :  { %v428_v16 = vsel %vm402_vm0, %v2220_v8, 0  ;;  %v434_v21 = vsel %vm402_vm0, %v2222_v12, 0  ;;  %v2195_v22 = vcombine.high %v81_v9, %v89_v14  ;;  %v105_v24 = vld [vmem:[#allocation5 + $0xf8] sm:$0xff]  ;;  %v2192_v25 = vcombine.low %v80_v4, %v88_v5  ;;  %v2588_v49 = vld [vmem:[#allocation8 + $0x18] sm:$0xff]   ;;  %v2591_v52 = vld [vmem:[#allocation8 + $0xe0] sm:$0xff]  }
  0x5a   :  { %2229 = vmatmul.mubr.msk.bf16.vlgmr.msra.gmra.mrb[0].mxu0 %vm398_vm1, %v2916_v35  ;;  %2231 = vmatmul.mubr.msk.bf16.vlgmr.msra.gmra.mrb[0].mxu1 %vm398_vm1, %v2916_v35  ;;  %v2194_v26 = vcombine.low %v81_v9, %v89_v14  ;;  %v2209_v27 = vcombine.high %v96_v15, %v104_v18  ;;  %v440_v28 = vsel %vm402_vm0, %v2224_v19, 0  ;;  %v446_v29 = vsel %vm402_vm0, %v2226_v20, 0  ;;  %v2578_v40 = vld [vmem:[#allocation8 + $0x48] sm:$0xff]   ;;  %v2589_v50 = vld [vmem:[#allocation8 + $0x98] sm:$0xff]   ;;  %v2598_v58 = vld [vmem:[#allocation8 + $0x70] sm:$0xff]  }
  0x5b   :  { %534 = vmatpush1.bf16.msra.mxu0 %v2184_v36  ;;  %575 = vmatpush1.bf16.msra.mxu1 %v2186_v37  ;;  %v2211_v30 = vcombine.high %v97_v23, %v105_v24  ;;  %v2208_v31 = vcombine.low %v96_v15, %v104_v18  ;;  %v2210_v32 = vcombine.low %v97_v23, %v105_v24  ;;  %v2574_v36 = vld [vmem:[#allocation8 + $0x40] sm:$0xff]   ;;  %v2579_v41 = vld [vmem:[#allocation8 + $0xc8] sm:$0xff]   ;;  %v2599_v59 = vld [vmem:[#allocation8 + $0xf0] sm:$0xff]   ;;  %v118_v5 = vlaneseq }
  0x5c   :  { %535 = vmatprep.subr.bf16.mxu0 %v2201_v38  ;;  %576 = vmatprep.subr.bf16.mxu1 %v2203_v39  ;;  %v2225_v33 = vcombine.high %v112_v10, %v112_v10  ;;  %v2227_v34 = vcombine.high %v113_v13, %v113_v13  ;;  %v2575_v37 = vld [vmem:[#allocation8 + $0xc0] sm:$0xff]   ;;  %v2595_v55 = vld [vmem:[#allocation8 + $0xe8] sm:$0xff]   ;;  %v2604_v1 = vld [vmem:[#allocation8 + $0x38] sm:$0xff]  }
  0x5d   :  { %565 = vmatprep.mubr.bf16.mxu0 %v2827_v0  ;;  %606 = vmatprep.mubr.bf16.mxu1 %v2827_v0  ;;  %v2576_v38 = vld [vmem:[#allocation8] sm:$0xff]   ;;  %v2605_v2 = vld [vmem:[#allocation8 + $0xb8] sm:$0xff]   ;;  %v2955_v8 = vld [vmem:[#allocation7] sm:$0xff] }
  0x5e   :  { %v2577_v39 = vld [vmem:[#allocation8 + $0x80] sm:$0xff]  }
  0x5f   :  { %536 = vmatpush1.bf16.msra.mxu0 %v2200_v42  ;;  %577 = vmatpush1.bf16.msra.mxu1 %v2202_v44  ;;  %v2580_v42 = vld [vmem:[#allocation8 + $0x8] sm:$0xff]   ;;  %v2583_v44 = vld [vmem:[#allocation8 + $0xd0] sm:$0xff]   ;;  %v2607_v4 = vld [vmem:[#allocation8 + $0x1c0] sm:$0xff]  }
  0x60   :  { %2232 = vmatprep.subr.msk.bf16.mxu0 %vm402_vm0, %v2217_v45  ;;  %2234 = vmatprep.subr.msk.bf16.mxu1 %vm402_vm0, %v2219_v48  ;;  %v2584_v45 = vld [vmem:[#allocation8 + $0x10] sm:$0xff]   ;;  %v2587_v48 = vld [vmem:[#allocation8 + $0xd8] sm:$0xff]  }
  0x63   :  { %538 = vmatpush1.bf16.msra.mxu0 %v416_v53  ;;  %579 = vmatpush1.bf16.msra.mxu1 %v422_v56  ;;  %v2593_v53 = vld [vmem:[#allocation8 + $0xa0] sm:$0xff]   ;;  %v2596_v56 = vld [vmem:[#allocation8 + $0x28] sm:$0xff]  }
  0x64   :  { %615 = vmatprep.subr.bf16.mxu0 %v2189_v54  ;;  %656 = vmatprep.subr.bf16.mxu1 %v2191_v57  ;;  %v2594_v54 = vld [vmem:[#allocation8 + $0x68] sm:$0xff]  }
  0x65   :  { %v2597_v57 = vld [vmem:[#allocation8 + $0xa8] sm:$0xff]  }
  0x66   :  { %2233 = vmatmul.mubr.msk.bf16.vlgmr.msra.gmra.mrb[4].mxu0 %vm398_vm1, %v2916_v35  ;;  %2235 = vmatmul.mubr.msk.bf16.vlgmr.msra.gmra.mrb[4].mxu1 %vm398_vm1, %v2916_v35 }
  0x67   :  { %616 = vmatpush1.bf16.msra.mxu0 %v2188_v60  ;;  %657 = vmatpush1.bf16.msra.mxu1 %v2190_v61  ;;  %v2600_v60 = vld [vmem:[#allocation8 + $0x30] sm:$0xff]  }
  0x68   :  { %617 = vmatprep.subr.bf16.mxu0 %v2205_v62  ;;  %658 = vmatprep.subr.bf16.mxu1 %v2207_v63  ;;  %v2601_v61 = vld [vmem:[#allocation8 + $0xb0] sm:$0xff]   ;;  %v2602_v62 = vld [vmem:[#allocation8 + $0x78] sm:$0xff]  }
  0x69   :  { %647 = vmatprep.mubr.bf16.mxu0 %v2827_v0  ;;  %688 = vmatprep.mubr.bf16.mxu1 %v2827_v0  ;;  %v2603_v63 = vld [vmem:[#allocation8 + $0xf8] sm:$0xff]  }
  0x6b   :  { %618 = vmatpush1.bf16.msra.mxu0 %v2204_v3  ;;  %659 = vmatpush1.bf16.msra.mxu1 %v2206_v6  ;;  %v2606_v3 = vld [vmem:[#allocation8 + $0x140] sm:$0xff]   ;;  %v2952_v6 = vshrl.u32 %v118_v5, 7 }
  0x6c   :  { %2236 = vmatprep.subr.msk.bf16.mxu0 %vm402_vm0, %v2221_v7  ;;  %2238 = vmatprep.subr.msk.bf16.mxu1 %vm402_vm0, %v2223_v11 }
  0x6d   :  { %v120_v7 = vsub.s32 0, %v2952_v6  ;;  %v128_v9 = vsub.s32 2, %v2952_v6  ;;  %v124_v10 = vsub.s32 1, %v2952_v6  ;;  %v132_v11 = vsub.s32 3, %v2952_v6 }
  0x6f   :  { %620 = vmatpush1.bf16.msra.mxu0 %v428_v16  ;;  %661 = vmatpush1.bf16.msra.mxu1 %v434_v21  ;;  %v121_v12 = vrot.slane %v2955_v8, %v120_v7  ;;  %v129_v13 = vrot.slane %v2955_v8, %v128_v9  ;;  %v125_v14 = vrot.slane %v2955_v8, %v124_v10 }
  0x70   :  { %697 = vmatprep.subr.bf16.mxu0 %v2193_v17  ;;  %738 = vmatprep.subr.bf16.mxu1 %v2195_v22  ;;  %v133_v15 = vrot.slane %v2955_v8, %v132_v11 }
  0x72   :  { %2237 = vmatmul.mubr.msk.bf16.vlgmr.msra.gmra.mrb[8].mxu0 %vm398_vm1, %v2916_v35  ;;  %2239 = vmatmul.mubr.msk.bf16.vlgmr.msra.gmra.mrb[8].mxu1 %vm398_vm1, %v2916_v35 }
  0x73   :  { %698 = vmatpush1.bf16.msra.mxu0 %v2192_v25  ;;  %739 = vmatpush1.bf16.msra.mxu1 %v2194_v26 }
  0x74   :  { %699 = vmatprep.subr.bf16.mxu0 %v2209_v27  ;;  %740 = vmatprep.subr.bf16.mxu1 %v2211_v30 }
  0x75   :  { %729 = vmatprep.mubr.bf16.mxu0 %v2827_v0  ;;  %770 = vmatprep.mubr.bf16.mxu1 %v2827_v0  ;;  %v2581_v0 = vld [vmem:[#allocation8 + $0x88] sm:$0xff]  }
  0x77   :  { %700 = vmatpush1.bf16.msra.mxu0 %v2208_v31  ;;  %741 = vmatpush1.bf16.msra.mxu1 %v2210_v32 }
  0x78   :  { %2240 = vmatprep.subr.msk.bf16.mxu0 %vm402_vm0, %v2225_v33  ;;  %2242 = vmatprep.subr.msk.bf16.mxu1 %vm402_vm0, %v2227_v34  ;;  %v2608_v34 = vld [vmem:[#allocation8 + $0x100] sm:$0xff]  }
  0x7b   :  { %702 = vmatpush1.bf16.msra.mxu0 %v440_v28  ;;  %743 = vmatpush1.bf16.msra.mxu1 %v446_v29 }
  0x7c   :  { %2373 = vmatprep.subr.bf16.mxu0 %v2574_v36  ;;  %2395 = vmatprep.subr.bf16.mxu1 %v2575_v37  ;;  %v140_v36 = vsub.s32 5, %v2952_v6 }
  0x7e   :  { %2241 = vmatmul.mubr.msk.bf16.vlgmr.msra.gmra.mrb[12].mxu0 %vm398_vm1, %v2916_v35  ;;  %2243 = vmatmul.mubr.msk.bf16.vlgmr.msra.gmra.mrb[12].mxu1 %vm398_vm1, %v2916_v35  ;;  %v2592_v35 = vld [vmem:[#allocation8 + $0x20] sm:$0xff]  }
  0x7f   :  { %2374 = vmatpush3.bf16.msra.mxu0 %v2576_v38  ;;  %2396 = vmatpush3.bf16.msra.mxu1 %v2577_v39  ;;  %v2609_v39 = vld [vmem:[#allocation8 + $0x180] sm:$0xff]  }
  0x80   :  { %2375 = vmatprep.subr.bf16.mxu0 %v2578_v40  ;;  %2397 = vmatprep.subr.bf16.mxu1 %v2579_v41  ;;  %v2610_v40 = vld [vmem:[#allocation8 + $0x148] sm:$0xff]   ;;  %v148_v41 = vsub.s32 7, %v2952_v6 }
  0x83   :  { %2376 = vmatpush3.bf16.msra.mxu0 %v2580_v42  ;;  %2398 = vmatpush3.bf16.msra.mxu1 %v2581_v0  ;;  %v2611_v42 = vld [vmem:[#allocation8 + $0x1c8] sm:$0xff]  }
  0x84   :  { %2377 = vmatprep.subr.bf16.mxu0 %v2582_v43  ;;  %2399 = vmatprep.subr.bf16.mxu1 %v2583_v44  ;;  %v2612_v0 = vld [vmem:[#allocation8 + $0x108] sm:$0xff]   ;;  %v141_v43 = vrot.slane %v2955_v8, %v140_v36 }
  0x85   :  { %v2613_v44 = vld [vmem:[#allocation8 + $0x188] sm:$0xff]  }
  0x87   :  { %2378 = vmatpush3.bf16.msra.mxu0 %v2584_v45  ;;  %2400 = vmatpush3.bf16.msra.mxu1 %v2585_v46  ;;  %v2614_v45 = vld [vmem:[#allocation8 + $0x150] sm:$0xff]   ;;  %v149_v46 = vrot.slane %v2955_v8, %v148_v41 }
  0x88   :  { %2379 = vmatprep.subr.bf16.mxu0 %v2586_v47  ;;  %2401 = vmatprep.subr.bf16.mxu1 %v2587_v48  ;;  %v2615_v47 = vld [vmem:[#allocation8 + $0x1d0] sm:$0xff]  }
  0x8b   :  { %2380 = vmatpush3.bf16.msra.mxu0 %v2588_v49  ;;  %2402 = vmatpush3.bf16.msra.mxu1 %v2589_v50 }
  0x8c   :  { %2381 = vmatprep.subr.bf16.mxu0 %v2590_v51  ;;  %2403 = vmatprep.subr.bf16.mxu1 %v2591_v52  ;;  %v2616_v51 = vld [vmem:[#allocation8 + $0x110] sm:$0xff]  }
  0x8f   :  { %2382 = vmatpush3.bf16.msra.mxu0 %v2592_v35  ;;  %2404 = vmatpush3.bf16.msra.mxu1 %v2593_v53 }
  0x90   :  { %2383 = vmatprep.subr.bf16.mxu0 %v2594_v54  ;;  %2405 = vmatprep.subr.bf16.mxu1 %v2595_v55  ;;  %v2617_v54 = vld [vmem:[#allocation8 + $0x190] sm:$0xff]   ;;  %v2618_v55 = vld [vmem:[#allocation8 + $0x158] sm:$0xff]  }
  0x93   :  { %2384 = vmatpush3.bf16.msra.mxu0 %v2596_v56  ;;  %2406 = vmatpush3.bf16.msra.mxu1 %v2597_v57 }
  0x94   :  { %2385 = vmatprep.subr.bf16.mxu0 %v2598_v58  ;;  %2407 = vmatprep.subr.bf16.mxu1 %v2599_v59  ;;  %v2619_v59 = vld [vmem:[#allocation8 + $0x1d8] sm:$0xff]  }
  0x97   :  { %2386 = vmatpush3.bf16.msra.mxu0 %v2600_v60  ;;  %2408 = vmatpush3.bf16.msra.mxu1 %v2601_v61 }
  0x98   :  { %2387 = vmatprep.subr.bf16.mxu0 %v2602_v62  ;;  %2409 = vmatprep.subr.bf16.mxu1 %v2603_v63  ;;  %v2620_v63 = vld [vmem:[#allocation8 + $0x118] sm:$0xff]  }
  0x9b   :  { %2388 = vmatpush3.bf16.msra.mxu0 %v2604_v1  ;;  %2410 = vmatpush3.bf16.msra.mxu1 %v2605_v2  ;;  %v2984_v2 = vld [vmem:[#allocation7 + $0x8] sm:$0xff] }
  0x9c   :  { %2417 = vmatprep.subr.bf16.mxu0 %v2606_v3  ;;  %2439 = vmatprep.subr.bf16.mxu1 %v2607_v4  ;;  %v2621_v3 = vld [vmem:[#allocation8 + $0x198] sm:$0xff]   ;;  %v2622_v4 = vld [vmem:[#allocation8 + $0x160] sm:$0xff]  }
 0x12d   :  { %v485_v16 = vpop.f32.mrb[0].mxu0  ;;  %v526_v18 = vpop.f32.mrb[0].mxu1 }
 0x12e   :  { %v486_v17 = vadd.f32 %v485_v16, %v121_v12  ;;  %v487_v19 = vpop.f32.mrb[1].mxu0  ;;  %v527_v20 = vadd.f32 %v526_v18, %v129_v13  ;;  %v528_v22 = vpop.f32.mrb[1].mxu1  ;;  %v2623_v12 = vld [vmem:[#allocation8 + $0x1e0] sm:$0xff]   ;;  %v136_v13 = vsub.s32 4, %v2952_v6  ;;  %v144_v16 = vsub.s32 6, %v2952_v6  ;;  %v2668_v6 = vld [vmem:[#allocation8 + $0x238] sm:$0xff]  }
 0x12f   :  { %v488_v21 = vadd.f32 %v487_v19, %v125_v14  ;;  %v489_v23 = vpop.f32.mrb[2].mxu0  ;;  %v529_v25 = vadd.f32 %v528_v22, %v133_v15  ;;  %v530_v26 = vpop.f32.mrb[2].mxu1  ;;  %v153_v14 = vrot.slane %v2984_v2, %v120_v7  ;;  %v2624_v15 = vld [vmem:[#allocation8 + $0x120] sm:$0xff]   ;;  %v2626_v19 = vld [vmem:[#allocation8 + $0x168] sm:$0xff]  }
 0x130   :  { %v779_v24 = vmax.f32 %v486_v17, 0.0  ;;  %v490_v27 = vpop.f32.mrb[3].mxu0  ;;  %v781_v28 = vmax.f32 %v527_v20, 0.0  ;;  %v531_v30 = vpop.f32.mrb[3].mxu1  ;;  %v161_v17 = vrot.slane %v2984_v2, %v128_v9  ;;  %v2625_v18 = vld [vmem:[#allocation8 + $0x1a0] sm:$0xff]   ;;  %v2627_v20 = vld [vmem:[#allocation8 + $0x1e8] sm:$0xff]   ;;  %v137_v22 = vrot.slane %v2955_v8, %v136_v13 }
 0x131   :  { %v780_v29 = vmax.f32 %v488_v21, 0.0  ;;  %v782_v31 = vmax.f32 %v529_v25, 0.0  ;;  %v2628_v25 = vld [vmem:[#allocation8 + $0x128] sm:$0xff]   ;;  %v145_v26 = vrot.slane %v2955_v8, %v144_v16  ;;  %v2630_v30 = vld [vmem:[#allocation8 + $0x170] sm:$0xff]   ;;  %v165_v8 = vrot.slane %v2984_v2, %v132_v11 }
 0x132   :  { %v797_v32 = vpack.c.bf16 %v781_v28, %v781_v28  ;;  %v795_v37 = vpack.c.bf16 %v779_v24, %v779_v24  ;;  %v177_v11 = vrot.slane %v2984_v2, %v144_v16  ;;  %v2645_v16 = vld [vmem:[#allocation8 + $0x288] sm:$0xff]  }
 0x133   :  { %v796_v33 = vpack.c.bf16 %v780_v29, %v780_v29  ;;  %v798_v38 = vpack.c.bf16 %v782_v31, %v782_v31  ;;  %v2629_v29 = vld [vmem:[#allocation8 + $0x1a8] sm:$0xff]  }
 0x135   :  { %1874 = vmatprep.mubr.bf16.mxu0 %v796_v33  ;;  %1914 = vmatprep.mubr.bf16.mxu1 %v798_v38  ;;  %v2631_v33 = vld [vmem:[#allocation8 + $0x1f0] sm:$0xff]  }
 0x136   :  { %1875 = vmatmul.mubr.bf16.vlgmr.msra.gmra.mrb[16].mxu0 %v795_v37  ;;  %1915 = vmatmul.mubr.bf16.vlgmr.msra.gmra.mrb[16].mxu1 %v797_v32 }
 0x137   :  { %2418 = vmatpush3.bf16.msra.mxu0 %v2608_v34  ;;  %2440 = vmatpush3.bf16.msra.mxu1 %v2609_v39  ;;  %v157_v34 = vrot.slane %v2984_v2, %v124_v10 }
 0x138   :  { %2419 = vmatprep.subr.bf16.mxu0 %v2610_v40  ;;  %2441 = vmatprep.subr.bf16.mxu1 %v2611_v42  ;;  %v2632_v40 = vld [vmem:[#allocation8 + $0x130] sm:$0xff]  }
 0x139   :  { %v2980_v48 = vpop.f32.mrb[4].mxu0  ;;  %v2982_v50 = vpop.f32.mrb[4].mxu1  ;;  %v2633_v42 = vld [vmem:[#allocation8 + $0x1b0] sm:$0xff]  }
 0x13a   :  { %v569_v49 = vpop.f32.mrb[5].mxu0  ;;  %v610_v53 = vpop.f32.mrb[5].mxu1  ;;  %v568_v38 = vadd.f32 %v2980_v48, %v137_v22  ;;  %v609_v39 = vadd.f32 %v2982_v50, %v145_v26  ;;  %v2636_v48 = vld [vmem:[#allocation8 + $0x138] sm:$0xff]   ;;  %v2638_v50 = vld [vmem:[#allocation8 + $0x240] sm:$0xff]  }
 0x13b   :  { %2420 = vmatpush3.bf16.msra.mxu0 %v2612_v0  ;;  %v570_v52 = vadd.f32 %v569_v49, %v141_v43  ;;  %v571_v35 = vpop.f32.mrb[6].mxu0  ;;  %2442 = vmatpush3.bf16.msra.mxu1 %v2613_v44  ;;  %v611_v57 = vadd.f32 %v610_v53, %v149_v46  ;;  %v612_v58 = vpop.f32.mrb[6].mxu1  ;;  %v2634_v0 = vld [vmem:[#allocation8 + $0x178] sm:$0xff]   ;;  %v169_v46 = vrot.slane %v2984_v2, %v136_v13  ;;  %v2655_v26 = vld [vmem:[#allocation8 + $0x2e0] sm:$0xff]  }
 0x13c   :  { %2421 = vmatprep.subr.bf16.mxu0 %v2614_v45  ;;  %v572_v56 = vpop.f32.mrb[7].mxu0  ;;  %2443 = vmatprep.subr.bf16.mxu1 %v2615_v47  ;;  %v613_v61 = vpop.f32.mrb[7].mxu1  ;;  %v2635_v43 = vld [vmem:[#allocation8 + $0x1f8] sm:$0xff]   ;;  %v783_v45 = vmax.f32 %v568_v38, 0.0  ;;  %v785_v47 = vmax.f32 %v609_v39, 0.0  ;;  %v181_v38 = vrot.slane %v2984_v2, %v148_v41  ;;  %v2665_v39 = vld [vmem:[#allocation8 + $0x2b0] sm:$0xff]  }
 0x13d   :  { %v784_v60 = vmax.f32 %v570_v52, 0.0  ;;  %v786_v62 = vmax.f32 %v611_v57, 0.0  ;;  %v2637_v49 = vld [vmem:[#allocation8 + $0x1b8] sm:$0xff]  }
 0x13e   :  { %v799_v53 = vpack.c.bf16 %v783_v45, %v783_v45  ;;  %v801_v58 = vpack.c.bf16 %v785_v47, %v785_v47  ;;  %v2651_v22 = vld [vmem:[#allocation8 + $0x2d8] sm:$0xff]   ;;  %v2671_v45 = vld [vmem:[#allocation8 + $0x3c0] sm:$0xff]  }
 0x13f   :  { %2422 = vmatpush3.bf16.msra.mxu0 %v2616_v51  ;;  %v800_v1 = vpack.c.bf16 %v784_v60, %v784_v60  ;;  %2444 = vmatpush3.bf16.msra.mxu1 %v2617_v54  ;;  %v802_v5 = vpack.c.bf16 %v786_v62, %v786_v62  ;;  %v2639_v51 = vld [vmem:[#allocation8 + $0x2c0] sm:$0xff]   ;;  %v2669_v41 = vld [vmem:[#allocation8 + $0x2b8] sm:$0xff]  }
 0x140   :  { %2423 = vmatprep.subr.bf16.mxu0 %v2618_v55  ;;  %2445 = vmatprep.subr.bf16.mxu1 %v2619_v59  ;;  %v2640_v59 = vld [vmem:[#allocation8 + $0x200] sm:$0xff]  }
 0x141   :  { %1954 = vmatprep.mubr.bf16.mxu0 %v800_v1  ;;  %1994 = vmatprep.mubr.bf16.mxu1 %v802_v5  ;;  %v2642_v1 = vld [vmem:[#allocation8 + $0x248] sm:$0xff]  }
 0x142   :  { %v2643_v5 = vld [vmem:[#allocation8 + $0x2c8] sm:$0xff]  }
 0x143   :  { %2424 = vmatpush3.bf16.msra.mxu0 %v2620_v63  ;;  %2446 = vmatpush3.bf16.msra.mxu1 %v2621_v3  ;;  %v2641_v63 = vld [vmem:[#allocation8 + $0x280] sm:$0xff]  }
 0x144   :  { %2425 = vmatprep.subr.bf16.mxu0 %v2622_v4  ;;  %2447 = vmatprep.subr.bf16.mxu1 %v2623_v12 }
 0x145   :  { %v649_v21 = vpop.f32.mrb[8].mxu0  ;;  %v690_v24 = vpop.f32.mrb[8].mxu1 }
 0x146   :  { %v2995_v23 = vadd.f32 %v649_v21, %v153_v14  ;;  %v651_v7 = vpop.f32.mrb[9].mxu0  ;;  %v2998_v28 = vadd.f32 %v690_v24, %v161_v17  ;;  %v692_v9 = vpop.f32.mrb[9].mxu1  ;;  %v2646_v17 = vld [vmem:[#allocation8 + $0x250] sm:$0xff]   ;;  %v2650_v21 = vld [vmem:[#allocation8 + $0x258] sm:$0xff]  }
 0x147   :  { %2426 = vmatpush3.bf16.msra.mxu0 %v2624_v15  ;;  %v653_v27 = vpop.f32.mrb[10].mxu0  ;;  %2448 = vmatpush3.bf16.msra.mxu1 %v2625_v18  ;;  %v694_v32 = vpop.f32.mrb[10].mxu1  ;;  %v652_v44 = vadd.f32 %v651_v7, %v157_v34  ;;  %v693_v10 = vadd.f32 %v692_v9, %v165_v8  ;;  %v2644_v15 = vld [vmem:[#allocation8 + $0x208] sm:$0xff]   ;;  %v2647_v18 = vld [vmem:[#allocation8 + $0x2d0] sm:$0xff]   ;;  %v2652_v7 = vld [vmem:[#allocation8 + $0x218] sm:$0xff]  }
 0x148   :  { %2427 = vmatprep.subr.bf16.mxu0 %v2626_v19  ;;  %v654_v31 = vpop.f32.mrb[11].mxu0  ;;  %2449 = vmatprep.subr.bf16.mxu1 %v2627_v20  ;;  %v695_v37 = vpop.f32.mrb[11].mxu1  ;;  %v2648_v19 = vld [vmem:[#allocation8 + $0x210] sm:$0xff]   ;;  %v2653_v24 = vld [vmem:[#allocation8 + $0x298] sm:$0xff]   ;;  %v2656_v27 = vld [vmem:[#allocation8 + $0x220] sm:$0xff]  }
 0x149   :  { %v788_v52 = vmax.f32 %v652_v44, 0.0  ;;  %v790_v54 = vmax.f32 %v693_v10, 0.0  ;;  %v2649_v20 = vld [vmem:[#allocation8 + $0x290] sm:$0xff]   ;;  %v2657_v9 = vld [vmem:[#allocation8 + $0x2a0] sm:$0xff]   ;;  %v2660_v31 = vld [vmem:[#allocation8 + $0x228] sm:$0xff]   ;;  %v173_v37 = vrot.slane %v2984_v2, %v140_v36  ;;  %v789_v36 = vmax.f32 %v2998_v28, 0.0 }
 0x14a   :  { %v2661_v32 = vld [vmem:[#allocation8 + $0x2a8] sm:$0xff]   ;;  %v2663_v34 = vld [vmem:[#allocation8 + $0x2f0] sm:$0xff]   ;;  %v2670_v2 = vld [vmem:[#allocation8 + $0x340] sm:$0xff]  }
 0x14b   :  { %2428 = vmatpush3.bf16.msra.mxu0 %v2628_v25  ;;  %2450 = vmatpush3.bf16.msra.mxu1 %v2629_v29  ;;  %v804_v12 = vpack.c.bf16 %v788_v52, %v788_v52  ;;  %v806_v14 = vpack.c.bf16 %v790_v54, %v790_v54  ;;  %v2654_v25 = vld [vmem:[#allocation8 + $0x260] sm:$0xff]   ;;  %v2658_v29 = vld [vmem:[#allocation8 + $0x268] sm:$0xff]   ;;  %v2664_v8 = vld [vmem:[#allocation8 + $0x230] sm:$0xff]  }
 0x14c   :  { %2429 = vmatprep.subr.bf16.mxu0 %v2630_v30  ;;  %2451 = vmatprep.subr.bf16.mxu1 %v2631_v33  ;;  %v2659_v30 = vld [vmem:[#allocation8 + $0x2e8] sm:$0xff]   ;;  %v2662_v33 = vld [vmem:[#allocation8 + $0x270] sm:$0xff]  }
 0x14d   :  { %v2675_v28 = vld [vmem:[#allocation8 + $0x3c8] sm:$0xff]   ;;  %v2679_v54 = vld [vmem:[#allocation8 + $0x3d0] sm:$0xff]  }
 0x14e   :  { %v2676_v52 = vld [vmem:[#allocation8 + $0x308] sm:$0xff]  }
 0x14f   :  { %2430 = vmatpush3.bf16.msra.mxu0 %v2632_v40  ;;  %2452 = vmatpush3.bf16.msra.mxu1 %v2633_v42  ;;  %v2666_v40 = vld [vmem:[#allocation8 + $0x278] sm:$0xff]  }
 0x150   :  { %2431 = vmatprep.subr.bf16.mxu0 %v2634_v0  ;;  %2453 = vmatprep.subr.bf16.mxu1 %v2635_v43  ;;  %v2667_v42 = vld [vmem:[#allocation8 + $0x2f8] sm:$0xff]   ;;  %v787_v43 = vmax.f32 %v2995_v23, 0.0  ;;  %v2673_v23 = vld [vmem:[#allocation8 + $0x380] sm:$0xff]  }
 0x151   :  { %v731_v35 = vpop.f32.mrb[12].mxu0  ;;  %v772_v57 = vpop.f32.mrb[12].mxu1 }
 0x152   :  { %v3010_v55 = vadd.f32 %v731_v35, %v169_v46  ;;  %v3012_v56 = vpop.f32.mrb[13].mxu0  ;;  %v3014_v61 = vadd.f32 %v772_v57, %v177_v11  ;;  %v3016_v62 = vpop.f32.mrb[13].mxu1  ;;  %v803_v46 = vpack.c.bf16 %v787_v43, %v787_v43  ;;  %v2672_v11 = vld [vmem:[#allocation8 + $0x300] sm:$0xff]   ;;  %v2677_v35 = vld [vmem:[#allocation8 + $0x388] sm:$0xff]   ;;  %v2681_v57 = vld [vmem:[#allocation8 + $0x390] sm:$0xff]  }
 0x153   :  { %2432 = vmatpush3.bf16.msra.mxu0 %v2636_v48  ;;  %v735_v60 = vpop.f32.mrb[14].mxu0  ;;  %2454 = vmatpush3.bf16.msra.mxu1 %v2637_v49  ;;  %v776_v4 = vpop.f32.mrb[14].mxu1  ;;  %v734_v0 = vadd.f32 %v3012_v56, %v173_v37  ;;  %v775_v44 = vadd.f32 %v3016_v62, %v181_v38  ;;  %v805_v48 = vpack.c.bf16 %v789_v36, %v789_v36  ;;  %v2674_v49 = vld [vmem:[#allocation8 + $0x348] sm:$0xff]   ;;  %v2680_v56 = vld [vmem:[#allocation8 + $0x310] sm:$0xff]   ;;  %v2685_v62 = vld [vmem:[#allocation8 + $0x398] sm:$0xff]  }
 0x154   :  { %2461 = vmatprep.subr.bf16.mxu0 %v2638_v50  ;;  %v736_v3 = vpop.f32.mrb[15].mxu0  ;;  %2483 = vmatprep.subr.bf16.mxu1 %v2639_v51  ;;  %v777_v13 = vpop.f32.mrb[15].mxu1  ;;  %v2684_v60 = vld [vmem:[#allocation8 + $0x318] sm:$0xff]   ;;  %v2689_v4 = vld [vmem:[#allocation8 + $0x3a0] sm:$0xff]  }
 0x155   :  { %v792_v10 = vmax.f32 %v734_v0, 0.0  ;;  %v794_v47 = vmax.f32 %v775_v44, 0.0  ;;  %v2688_v3 = vld [vmem:[#allocation8 + $0x320] sm:$0xff]   ;;  %v2692_v13 = vld [vmem:[#allocation8 + $0x328] sm:$0xff]  }
 0x156   :  { %1955 = vmatmul.mubr.bf16.vlgmr.msra.gmra.mrb[20].mxu0 %v799_v53  ;;  %1995 = vmatmul.mubr.bf16.vlgmr.msra.gmra.mrb[20].mxu1 %v801_v58  ;;  %v2678_v53 = vld [vmem:[#allocation8 + $0x350] sm:$0xff]   ;;  %v2682_v58 = vld [vmem:[#allocation8 + $0x358] sm:$0xff]  }
 0x157   :  { %2462 = vmatpush3.bf16.msra.mxu0 %v2640_v59  ;;  %2484 = vmatpush3.bf16.msra.mxu1 %v2641_v63  ;;  %v808_v50 = vpack.c.bf16 %v792_v10, %v792_v10  ;;  %v810_v51 = vpack.c.bf16 %v794_v47, %v794_v47  ;;  %v2683_v59 = vld [vmem:[#allocation8 + $0x3d8] sm:$0xff]   ;;  %v2686_v63 = vld [vmem:[#allocation8 + $0x360] sm:$0xff]  }
 0x158   :  { %2463 = vmatprep.subr.bf16.mxu0 %v2642_v1  ;;  %2485 = vmatprep.subr.bf16.mxu1 %v2643_v5  ;;  %v2687_v1 = vld [vmem:[#allocation8 + $0x3e0] sm:$0xff]   ;;  %v2690_v5 = vld [vmem:[#allocation8 + $0x368] sm:$0xff]  }
 0x159   :  { %2034 = vmatprep.mubr.bf16.mxu0 %v804_v12  ;;  %2074 = vmatprep.mubr.bf16.mxu1 %v806_v14  ;;  %v2691_v12 = vld [vmem:[#allocation8 + $0x3e8] sm:$0xff]  }
 0x15a   :  { %v2693_v14 = vld [vmem:[#allocation8 + $0x3a8] sm:$0xff]  }
 0x15b   :  { %2464 = vmatpush3.bf16.msra.mxu0 %v2644_v15  ;;  %2486 = vmatpush3.bf16.msra.mxu1 %v2645_v16  ;;  %v2694_v15 = vld [vmem:[#allocation8 + $0x370] sm:$0xff]  }
 0x15c   :  { %2465 = vmatprep.subr.bf16.mxu0 %v2646_v17  ;;  %2487 = vmatprep.subr.bf16.mxu1 %v2647_v18  ;;  %v2695_v16 = vld [vmem:[#allocation8 + $0x3f0] sm:$0xff]  }
 0x15d   :  { %v2696_v17 = vld [vmem:[#allocation8 + $0x330] sm:$0xff]  }
 0x15e   :  { %v2697_v18 = vld [vmem:[#allocation8 + $0x3b0] sm:$0xff]  }
 0x15f   :  { %2466 = vmatpush3.bf16.msra.mxu0 %v2648_v19  ;;  %2488 = vmatpush3.bf16.msra.mxu1 %v2649_v20  ;;  %v2698_v19 = vld [vmem:[#allocation8 + $0x378] sm:$0xff]  }
 0x160   :  { %2467 = vmatprep.subr.bf16.mxu0 %v2650_v21  ;;  %2489 = vmatprep.subr.bf16.mxu1 %v2651_v22  ;;  %v2699_v20 = vld [vmem:[#allocation8 + $0x3f8] sm:$0xff]   ;;  %v793_v21 = vmax.f32 %v3014_v61, 0.0  ;;  %v2244_v61 = vld [vmem:[%s3049_s4] ss:$0 sm:$0xff]  ;;  %s2828_s4 = smov [#allocation10]  }
 0x161   :  { %v2700_v22 = vld [vmem:[#allocation8 + $0x338] sm:$0xff]   ;;  %s2169_s17 = sshll.u32 %s2828_s4, 4  ;;  %s2170_s17 = int_to_ptr.vmem [resolvable:$true] %s2169_s17 }
 0x162   :  { %s2790_s1 = scalar_lea.vmem %s2170_s17, 128  ;;  %p2795_p5 = scmp.lt.s32.totalorder %s2170_s17, %s2170_s17 }
 0x163   :  { %2468 = vmatpush3.bf16.msra.mxu0 %v2652_v7  ;;  %2490 = vmatpush3.bf16.msra.mxu1 %v2653_v24  ;;  %v791_v7 = vmax.f32 %v3010_v55, 0.0  ;;  %v2701_v24 = vld [vmem:[#allocation8 + $0x3b8] sm:$0xff]   ;;  %p2791_p4 = scmp.ne.s32.totalorder %s2170_s17, %s2790_s1  ;;  %p2796_p6 = scmp.lt.s32.totalorder %s2790_s1, %s2790_s1 }
 0x164   :  { %2469 = vmatprep.subr.bf16.mxu0 %v2654_v25  ;;  %2491 = vmatprep.subr.bf16.mxu1 %v2655_v26  ;;  %v809_v25 = vpack.c.bf16 %v793_v21, %v793_v21 }
 0x165   :  { %v807_v26 = vpack.c.bf16 %v791_v7, %v791_v7  ;;  %p2797_p7 = por %p2796_p6, %p2795_p5 }
 0x167   :  { %2470 = vmatpush3.bf16.msra.mxu0 %v2656_v27  ;;  %2492 = vmatpush3.bf16.msra.mxu1 %v2657_v9  ;;  %p2798_p8 = pnand %p2797_p7, %p2791_p4 }
 0x168   :  { %2471 = vmatprep.subr.bf16.mxu0 %v2658_v29  ;;  %2493 = vmatprep.subr.bf16.mxu1 %v2659_v30 }
 0x16b   :  { %2472 = vmatpush3.bf16.msra.mxu0 %v2660_v31  ;;  %2494 = vmatpush3.bf16.msra.mxu1 %v2661_v32 }
 0x16c   :  { %2473 = vmatprep.subr.bf16.mxu0 %v2662_v33  ;;  %2495 = vmatprep.subr.bf16.mxu1 %v2663_v34 }
 0x16f   :  { %2474 = vmatpush3.bf16.msra.mxu0 %v2664_v8  ;;  %2496 = vmatpush3.bf16.msra.mxu1 %v2665_v39 }
 0x170   :  { %2475 = vmatprep.subr.bf16.mxu0 %v2666_v40  ;;  %2497 = vmatprep.subr.bf16.mxu1 %v2667_v42 }
 0x173   :  { %2476 = vmatpush3.bf16.msra.mxu0 %v2668_v6  ;;  %2498 = vmatpush3.bf16.msra.mxu1 %v2669_v41 }
 0x174   :  { %2505 = vmatprep.subr.bf16.mxu0 %v2670_v2  ;;  %2527 = vmatprep.subr.bf16.mxu1 %v2671_v45 }
 0x176   :  { %2035 = vmatmul.mubr.bf16.vlgmr.msra.gmra.mrb[24].mxu0 %v803_v46  ;;  %2075 = vmatmul.mubr.bf16.vlgmr.msra.gmra.mrb[24].mxu1 %v805_v48 }
 0x177   :  { %2506 = vmatpush3.bf16.msra.mxu0 %v2672_v11  ;;  %2528 = vmatpush3.bf16.msra.mxu1 %v2673_v23 }
 0x178   :  { %2507 = vmatprep.subr.bf16.mxu0 %v2674_v49  ;;  %2529 = vmatprep.subr.bf16.mxu1 %v2675_v28 }
 0x179   :  { %2114 = vmatprep.mubr.bf16.mxu0 %v808_v50  ;;  %2154 = vmatprep.mubr.bf16.mxu1 %v810_v51 }
 0x17b   :  { %2508 = vmatpush3.bf16.msra.mxu0 %v2676_v52  ;;  %2530 = vmatpush3.bf16.msra.mxu1 %v2677_v35 }
 0x17c   :  { %2509 = vmatprep.subr.bf16.mxu0 %v2678_v53  ;;  %2531 = vmatprep.subr.bf16.mxu1 %v2679_v54 }
 0x17f   :  { %2510 = vmatpush3.bf16.msra.mxu0 %v2680_v56  ;;  %2532 = vmatpush3.bf16.msra.mxu1 %v2681_v57 }
 0x180   :  { %2511 = vmatprep.subr.bf16.mxu0 %v2682_v58  ;;  %2533 = vmatprep.subr.bf16.mxu1 %v2683_v59 }
 0x183   :  { %2512 = vmatpush3.bf16.msra.mxu0 %v2684_v60  ;;  %2534 = vmatpush3.bf16.msra.mxu1 %v2685_v62 }
 0x184   :  { %2513 = vmatprep.subr.bf16.mxu0 %v2686_v63  ;;  %2535 = vmatprep.subr.bf16.mxu1 %v2687_v1 }
 0x187   :  { %2514 = vmatpush3.bf16.msra.mxu0 %v2688_v3  ;;  %2536 = vmatpush3.bf16.msra.mxu1 %v2689_v4 }
 0x188   :  { %2515 = vmatprep.subr.bf16.mxu0 %v2690_v5  ;;  %2537 = vmatprep.subr.bf16.mxu1 %v2691_v12 }
 0x18b   :  { %2516 = vmatpush3.bf16.msra.mxu0 %v2692_v13  ;;  %2538 = vmatpush3.bf16.msra.mxu1 %v2693_v14 }
 0x18c   :  { %2517 = vmatprep.subr.bf16.mxu0 %v2694_v15  ;;  %2539 = vmatprep.subr.bf16.mxu1 %v2695_v16 }
 0x18f   :  { %2518 = vmatpush3.bf16.msra.mxu0 %v2696_v17  ;;  %2540 = vmatpush3.bf16.msra.mxu1 %v2697_v18 }
 0x190   :  { %2519 = vmatprep.subr.bf16.mxu0 %v2698_v19  ;;  %2541 = vmatprep.subr.bf16.mxu1 %v2699_v20 }
 0x193   :  { %2520 = vmatpush3.bf16.msra.mxu0 %v2700_v22  ;;  %2542 = vmatpush3.bf16.msra.mxu1 %v2701_v24 }
 0x196   :  { %2115 = vmatmul.mubr.bf16.vlgmr.msra.gmra.mrb[28].mxu0 %v807_v26  ;;  %2155 = vmatmul.mubr.bf16.vlgmr.msra.gmra.mrb[28].mxu1 %v809_v25 }
 0x209   :  { %v2389_v27 = vpop.f32.mrb[16].mxu0  ;;  %v2411_v9 = vpop.f32.mrb[16].mxu1 }
 0x20a   :  { %v2390_v29 = vpop.f32.mrb[17].mxu0  ;;  %v2412_v31 = vpop.f32.mrb[17].mxu1 }
 0x20b   :  { %v2391_v30 = vadd.f32 %v2390_v29, %v2389_v27  ;;  %v2392_v55 = vpop.f32.mrb[18].mxu0  ;;  %v2413_v32 = vadd.f32 %v2412_v31, %v2411_v9  ;;  %v2414_v33 = vpop.f32.mrb[18].mxu1 }
 0x20c   :  { %v2393_v34 = vpop.f32.mrb[19].mxu0  ;;  %v2415_v38 = vpop.f32.mrb[19].mxu1 }
 0x20d   :  { %v1877_v37 = vadd.f32 %v2391_v30, %v2244_v61 }
 0x20f   :  { %v1917_v8 = vadd.f32 %v2413_v32, %v1877_v37 }
 0x229   :  { %v2433_v39 = vpop.f32.mrb[20].mxu0  ;;  %v2455_v40 = vpop.f32.mrb[20].mxu1 }
 0x22a   :  { %v2434_v42 = vpop.f32.mrb[21].mxu0  ;;  %v2456_v43 = vpop.f32.mrb[21].mxu1 }
 0x22b   :  { %v2435_v0 = vadd.f32 %v2434_v42, %v2433_v39  ;;  %v2436_v44 = vpop.f32.mrb[22].mxu0  ;;  %v2457_v36 = vadd.f32 %v2456_v43, %v2455_v40  ;;  %v2458_v6 = vpop.f32.mrb[22].mxu1 }
 0x22c   :  { %v2437_v41 = vpop.f32.mrb[23].mxu0  ;;  %v2459_v45 = vpop.f32.mrb[23].mxu1 }
 0x22d   :  { %v1957_v2 = vadd.f32 %v2435_v0, %v1917_v8 }
 0x22f   :  { %v1997_v10 = vadd.f32 %v2457_v36, %v1957_v2 }
 0x249   :  { %v2477_v46 = vpop.f32.mrb[24].mxu0  ;;  %v2499_v47 = vpop.f32.mrb[24].mxu1 }
 0x24a   :  { %v2478_v48 = vpop.f32.mrb[25].mxu0  ;;  %v2500_v23 = vpop.f32.mrb[25].mxu1 }
 0x24b   :  { %v2479_v11 = vadd.f32 %v2478_v48, %v2477_v46  ;;  %v2480_v49 = vpop.f32.mrb[26].mxu0  ;;  %v2501_v28 = vadd.f32 %v2500_v23, %v2499_v47  ;;  %v2502_v50 = vpop.f32.mrb[26].mxu1 }
 0x24c   :  { %v2481_v51 = vpop.f32.mrb[27].mxu0  ;;  %v2503_v35 = vpop.f32.mrb[27].mxu1 }
 0x24d   :  { %v2037_v52 = vadd.f32 %v2479_v11, %v1997_v10 }
 0x24f   :  { %v2077_v53 = vadd.f32 %v2501_v28, %v2037_v52 }
 0x269   :  { %v2521_v54 = vpop.f32.mrb[28].mxu0  ;;  %v2543_v56 = vpop.f32.mrb[28].mxu1 }
 0x26a   :  { %v2522_v57 = vpop.f32.mrb[29].mxu0  ;;  %v2544_v59 = vpop.f32.mrb[29].mxu1 }
 0x26b   :  { %v2523_v58 = vadd.f32 %v2522_v57, %v2521_v54  ;;  %v2524_v60 = vpop.f32.mrb[30].mxu0  ;;  %v2545_v62 = vadd.f32 %v2544_v59, %v2543_v56  ;;  %v2546_v63 = vpop.f32.mrb[30].mxu1 }
 0x26c   :  { %v2525_v1 = vpop.f32.mrb[31].mxu0  ;;  %v2547_v4 = vpop.f32.mrb[31].mxu1 }
 0x26d   :  { %v2117_v3 = vadd.f32 %v2523_v58, %v2077_v53 }
 0x26f   :  { %v2157_v5 = vadd.f32 %v2545_v62, %v2117_v3 }
 0x271   :  { %2162 = vst [vmem:[#allocation10] sm:$0xff] %v2157_v5 }
 0x272   :  { %2801 = shalt.err (!%p2798_p8)
}
 0x273   :  { %s2802_s20 = scalar_lea.hbm %s3050_s5, 128 }
 0x274   :  { %p2803_p9 = scmp.ne.s32.totalorder %s3050_s5, %s2802_s20  ;;  %p2806_p10 = scmp.lt.u32.totalorder %s2802_s20, %s3050_s5 }
 0x276   :  { %p2808_p11 = pnand %p2806_p10, %p2803_p9 }
 0x278   :  { %2811 = shalt.err (!%p2808_p11)
}
 0x279   :  { %2172 = dma.vmem_to_hbm [thread:$0]  %s2170_s17, 128, %s3050_s5, [#allocation4]  }
 0x27a   :  { %2818 = dma.done.wait [#allocation4], 128  }
 0x27b   :  { %2819 = vsyncadd [#allocation4], 4294967168 }
 0x27c   :  { %2176 = vsyncpa [#allocation3], 1 }
 0x27d   :  { %2177 = vsyncpa [#allocation6], 1 }
 0x27e   :  { %2178 = vsyncpa [#allocation9], 1 }
 0x27f   :  { %2179 = vsyncpa [#allocation4], 1 }

</bundles_post_ra>
